<compile_context>
chip_gen: v6e
topology: v6e:2x2x1
jax: 0.10.0
libtpu: 0.0.40
codegen_flags: <defaults>
</compile_context>

<pallas_src>
import functools

import jax
import jax.numpy as jnp
from jax.experimental import pallas as pl
from jax.experimental.pallas import tpu as pltpu

LANES = 128  # TPU vreg lane width; all in-kernel activations are this wide.


def _round_up(n, m):
    return (n + m - 1) // m * m


def _elu(x):
    # ELU (alpha=1).  The where-select discards the inf of exp(large positive),
    # so no clamp is needed (exp(x)-1 vs expm1 differs by < 1e-7 near 0).
    return jnp.where(x > 0, x, jnp.exp(x) - 1.0)


def _mlp_from_slab(x, w_ref, lanes):
    """fc1 -> ELU -> fc2 -> ELU -> fc3 reading weights/biases from the packed slab."""
    w1 = w_ref[0:lanes, :]                       # (128, 128), w1 in [:d, :h]
    w2 = w_ref[lanes:2 * lanes, :]               # (128, 128), w2 in [:h, :h]
    w3 = w_ref[2 * lanes:3 * lanes, :]           # (128, 128), w3 in [:h, :d]
    bias = w_ref[3 * lanes:3 * lanes + 8, :]     # (8, 128): rows 0/1/2 = b1/b2/b3
    h1 = _elu(jnp.dot(x, w1, preferred_element_type=jnp.float32) + bias[0:1, :])
    h2 = _elu(jnp.dot(h1, w2, preferred_element_type=jnp.float32) + bias[1:2, :])
    return jnp.dot(h2, w3, preferred_element_type=jnp.float32) + bias[2:3, :]


def latent_ode_kernel(x_ref, w_ref, o_ref, *, lanes):
    """Single evaluation of the ODE func (matches LatentODEfunc.forward)."""
    o_ref[...] = _mlp_from_slab(x_ref[...], w_ref, lanes).astype(o_ref.dtype)


def latent_ode_euler_kernel(x_ref, w_ref, o_ref, *, lanes, num_steps, dt):
    """Fused fixed-step Euler integration: x <- x + dt * f(t, x), N times.

    The weight slab is read from VMEM inside the loop (never re-DMA'd), so the
    whole integration costs one launch + one slab DMA instead of N.
    """
    def step(_, x):
        return x + dt * _mlp_from_slab(x, w_ref, lanes)

    x_final = jax.lax.fori_loop(0, num_steps, step, x_ref[...])
    o_ref[...] = x_final.astype(o_ref.dtype)


def pack_params(params, latent_dim, nhidden, lanes=LANES):
    """Pack (w1,b1,w2,b2,w3,b3) into one (3*lanes + 8, lanes) f32 slab.

    Weights are stored (in_features, out_features), zero-padded to 128x128.
    Biases occupy rows 0/1/2 of a trailing (8, 128) tile.  Zero padding plus
    ELU(0) == 0 guarantees padding never leaks into the first `latent_dim`
    output columns, and padded state columns stay exactly zero under the
    fused Euler loop.
    """
    assert latent_dim <= lanes and nhidden <= lanes
    w1, b1, w2, b2, w3, b3 = params
    f32 = jnp.float32

    W1 = jnp.zeros((lanes, lanes), f32).at[:latent_dim, :nhidden].set(w1.astype(f32))
    W2 = jnp.zeros((lanes, lanes), f32).at[:nhidden, :nhidden].set(w2.astype(f32))
    W3 = jnp.zeros((lanes, lanes), f32).at[:nhidden, :latent_dim].set(w3.astype(f32))
    Bv = jnp.zeros((8, lanes), f32)
    Bv = Bv.at[0, :nhidden].set(b1.astype(f32))
    Bv = Bv.at[1, :nhidden].set(b2.astype(f32))
    Bv = Bv.at[2, :latent_dim].set(b3.astype(f32))

    return jnp.concatenate([W1, W2, W3, Bv], axis=0)   # (3*lanes + 8, lanes)


def _pad_input(x, b_pad, lanes):
    return jnp.pad(x.astype(jnp.float32),
                   ((0, b_pad - x.shape[0]), (0, lanes - x.shape[1])))


def latent_ode_forward(t, x, slab, latent_dim, *, lanes=LANES, batch_tile=512):
    """Pallas forward. `t` is accepted for API parity but unused (as in PyTorch)."""
    del t
    B = x.shape[0]
    rows = slab.shape[0]
    kernel = functools.partial(latent_ode_kernel, lanes=lanes)

    if B <= batch_tile:
        # Grid-less call: whole arrays are single VMEM-resident blocks; no
        # pipeline machinery or double buffering for this tiny problem.
        b_pad = _round_up(max(B, 8), 8)
        out = pl.pallas_call(
            kernel,
            out_shape=jax.ShapeDtypeStruct((b_pad, lanes), jnp.float32),
            in_specs=[
                pl.BlockSpec(memory_space=pltpu.MemorySpace.VMEM),  # x (padded)
                pl.BlockSpec(memory_space=pltpu.MemorySpace.VMEM),  # weight slab
            ],
            out_specs=pl.BlockSpec(memory_space=pltpu.MemorySpace.VMEM),
        )(_pad_input(x, b_pad, lanes), slab)
    else:
        # Large batch: tile over B so blocks stay within VMEM (v7x: 64 MiB) and
        # mark the axis "parallel" so v7x's 2 TensorCores split the work.
        b_pad = _round_up(B, batch_tile)
        out = pl.pallas_call(
            kernel,
            out_shape=jax.ShapeDtypeStruct((b_pad, lanes), jnp.float32),
            grid=(b_pad // batch_tile,),
            in_specs=[
                pl.BlockSpec((batch_tile, lanes), lambda i: (i, 0)),
                pl.BlockSpec((rows, lanes), lambda i: (0, 0)),
            ],
            out_specs=pl.BlockSpec((batch_tile, lanes), lambda i: (i, 0)),
            compiler_params=pltpu.CompilerParams(
                dimension_semantics=("parallel",)),
        )(_pad_input(x, b_pad, lanes), slab)

    return out[:B, :latent_dim].astype(x.dtype)


def latent_ode_euler(x0, slab, latent_dim, *, num_steps, dt, lanes=LANES):
    """Fused in-kernel Euler integration of dz/dt = f(t, z) from z = x0."""
    B = x0.shape[0]
    b_pad = _round_up(max(B, 8), 8)
    kernel = functools.partial(latent_ode_euler_kernel, lanes=lanes,
                               num_steps=int(num_steps), dt=float(dt))
    out = pl.pallas_call(
        kernel,
        out_shape=jax.ShapeDtypeStruct((b_pad, lanes), jnp.float32),
        in_specs=[
            pl.BlockSpec(memory_space=pltpu.MemorySpace.VMEM),
            pl.BlockSpec(memory_space=pltpu.MemorySpace.VMEM),
        ],
        out_specs=pl.BlockSpec(memory_space=pltpu.MemorySpace.VMEM),
    )(_pad_input(x0, b_pad, lanes), slab)
    return out[:B, :latent_dim].astype(x0.dtype)


def init_params(key, latent_dim=4, nhidden=20, dtype=jnp.float32):
    """PyTorch-default-like Linear init (U(-k, k), k = 1/sqrt(fan_in)).
    Weights are stored transposed: (in_features, out_features); biases (out,)."""
    ks = jax.random.split(key, 6)

    def linear(kw, kb, fan_in, fan_out):
        bound = 1.0 / (fan_in ** 0.5)
        w = jax.random.uniform(kw, (fan_in, fan_out), dtype, -bound, bound)
        b = jax.random.uniform(kb, (fan_out,), dtype, -bound, bound)
        return w, b

    w1, b1 = linear(ks[0], ks[1], latent_dim, nhidden)
    w2, b2 = linear(ks[2], ks[3], nhidden, nhidden)
    w3, b3 = linear(ks[4], ks[5], nhidden, latent_dim)
    return (w1, b1, w2, b2, w3, b3)


def reference_forward(t, x, params):
    del t
    w1, b1, w2, b2, w3, b3 = params
    h1 = jax.nn.elu(x @ w1 + b1)
    h2 = jax.nn.elu(h1 @ w2 + b2)
    return h2 @ w3 + b3


def reference_euler(x0, params, num_steps, dt):
    x = x0
    for _ in range(num_steps):
        x = x + dt * reference_forward(None, x, params)
    return x


if __name__ == "__main__":
    latent_dim, nhidden, batch = 4, 20, 8

    key = jax.random.PRNGKey(0)
    k_params, k_x, k_big = jax.random.split(key, 3)

    params = init_params(k_params, latent_dim=latent_dim, nhidden=nhidden)
    slab = pack_params(params, latent_dim, nhidden)   # packed once, reused
    x = jax.random.normal(k_x, (batch, latent_dim), dtype=jnp.float32)
    t = jnp.float32(0.0)  # unused, mirrors the PyTorch signature

    # 1) Single evaluation (exact LatentODEfunc.forward semantics).
    out = jax.block_until_ready(latent_ode_forward(t, x, slab, latent_dim))
    ref = reference_forward(t, x, params)
    assert out.shape == (batch, latent_dim)
    assert jnp.allclose(out, ref, atol=1e-5, rtol=1e-5), "forward mismatch"

    # 2) Batch-gridded path (parallel over batch tiles; v7x 2-TC friendly).
    x_big = jax.random.normal(k_big, (300, latent_dim), dtype=jnp.float32)
    out_big = jax.block_until_ready(
        latent_ode_forward(t, x_big, slab, latent_dim, batch_tile=128))
    ref_big = reference_forward(t, x_big, params)
    assert jnp.allclose(out_big, ref_big, atol=1e-5, rtol=1e-5), "gridded mismatch"

    # 3) Fused in-kernel Euler integration: slab stays VMEM-resident across steps.
    n_steps, dt = 16, 0.05
    z_T = jax.block_until_ready(
        latent_ode_euler(x, slab, latent_dim, num_steps=n_steps, dt=dt))
    z_ref = reference_euler(x, params, n_steps, dt)
    assert jnp.allclose(z_T, z_ref, atol=1e-4, rtol=1e-4), "fused Euler mismatch"
    # TODO(synk): adaptive-step / RK45 solvers need data-dependent step control
    # and are left to the host-side integrator driving latent_ode_forward.

    print("KERNEL_OK")
</pallas_src>

<mosaic_0001>
module attributes {stable_mosaic.version = 11 : i64} {
  func.func @latent_ode_kernel(%arg0: memref<8x128xf32, #tpu.memory_space<vmem>>, %arg1: memref<392x128xf32, #tpu.memory_space<vmem>>, %arg2: memref<8x128xf32, #tpu.memory_space<vmem>>) attributes {dimension_semantics = [], scalar_prefetch = 0 : i64, scratch_operands = 0 : i64, tpu.core_type = #tpu.core_type<tc>} {
    %c0 = arith.constant 0 : index
    %c0_0 = arith.constant 0 : index
    %0 = vector.load %arg0[%c0, %c0_0] : memref<8x128xf32, #tpu.memory_space<vmem>>, vector<8x128xf32>
    %c0_1 = arith.constant 0 : index
    %c0_2 = arith.constant 0 : index
    %1 = vector.load %arg1[%c0_1, %c0_2] : memref<392x128xf32, #tpu.memory_space<vmem>>, vector<128x128xf32>
    %c128 = arith.constant 128 : index
    %c0_3 = arith.constant 0 : index
    %2 = vector.load %arg1[%c128, %c0_3] : memref<392x128xf32, #tpu.memory_space<vmem>>, vector<128x128xf32>
    %c256 = arith.constant 256 : index
    %c0_4 = arith.constant 0 : index
    %3 = vector.load %arg1[%c256, %c0_4] : memref<392x128xf32, #tpu.memory_space<vmem>>, vector<128x128xf32>
    %c384 = arith.constant 384 : index
    %c0_5 = arith.constant 0 : index
    %4 = vector.load %arg1[%c384, %c0_5] : memref<392x128xf32, #tpu.memory_space<vmem>>, vector<8x128xf32>
    %cst = arith.constant dense<0.000000e+00> : vector<8x128xf32>
    %5 = tpu.matmul %0, %1, %cst {dimension_numbers = #tpu.dot_dimension_numbers<[1], [0], [0], [1], [0, 0, 1, 1], [], []>} : vector<8x128xf32>, vector<128x128xf32>, vector<8x128xf32> -> vector<8x128xf32>
    %6 = vector.extract_strided_slice %4 {offsets = [0, 0], sizes = [1, 128], strides = [1, 1]} : vector<8x128xf32> to vector<1x128xf32>
    %7 = vector.broadcast %6 : vector<1x128xf32> to vector<8x128xf32>
    %8 = arith.addf %5, %7 : vector<8x128xf32>
    %cst_6 = arith.constant 0.000000e+00 : f32
    %9 = vector.broadcast %cst_6 : f32 to vector<8x128xf32>
    %10 = arith.cmpf ogt, %8, %9 : vector<8x128xf32>
    %11 = math.exp %8 : vector<8x128xf32>
    %cst_7 = arith.constant 1.000000e+00 : f32
    %12 = vector.broadcast %cst_7 : f32 to vector<8x128xf32>
    %13 = arith.subf %11, %12 : vector<8x128xf32>
    %14 = arith.select %10, %8, %13 : vector<8x128xi1>, vector<8x128xf32>
    %cst_8 = arith.constant dense<0.000000e+00> : vector<8x128xf32>
    %15 = tpu.matmul %14, %2, %cst_8 {dimension_numbers = #tpu.dot_dimension_numbers<[1], [0], [0], [1], [0, 0, 1, 1], [], []>} : vector<8x128xf32>, vector<128x128xf32>, vector<8x128xf32> -> vector<8x128xf32>
    %16 = vector.extract_strided_slice %4 {offsets = [1, 0], sizes = [1, 128], strides = [1, 1]} : vector<8x128xf32> to vector<1x128xf32>
    %17 = vector.broadcast %16 : vector<1x128xf32> to vector<8x128xf32>
    %18 = arith.addf %15, %17 : vector<8x128xf32>
    %cst_9 = arith.constant 0.000000e+00 : f32
    %19 = vector.broadcast %cst_9 : f32 to vector<8x128xf32>
    %20 = arith.cmpf ogt, %18, %19 : vector<8x128xf32>
    %21 = math.exp %18 : vector<8x128xf32>
    %cst_10 = arith.constant 1.000000e+00 : f32
    %22 = vector.broadcast %cst_10 : f32 to vector<8x128xf32>
    %23 = arith.subf %21, %22 : vector<8x128xf32>
    %24 = arith.select %20, %18, %23 : vector<8x128xi1>, vector<8x128xf32>
    %cst_11 = arith.constant dense<0.000000e+00> : vector<8x128xf32>
    %25 = tpu.matmul %24, %3, %cst_11 {dimension_numbers = #tpu.dot_dimension_numbers<[1], [0], [0], [1], [0, 0, 1, 1], [], []>} : vector<8x128xf32>, vector<128x128xf32>, vector<8x128xf32> -> vector<8x128xf32>
    %26 = vector.extract_strided_slice %4 {offsets = [2, 0], sizes = [1, 128], strides = [1, 1]} : vector<8x128xf32> to vector<1x128xf32>
    %27 = vector.broadcast %26 : vector<1x128xf32> to vector<8x128xf32>
    %28 = arith.addf %25, %27 : vector<8x128xf32>
    %c0_12 = arith.constant 0 : index
    %c0_13 = arith.constant 0 : index
    %29 = vector.load %arg2[%c0_12, %c0_13] : memref<8x128xf32, #tpu.memory_space<vmem>>, vector<8x128xf32>
    tpu.vector_store %arg2[%c0_12, %c0_13], %28 {strides = array<i32>} : memref<8x128xf32, #tpu.memory_space<vmem>>, vector<8x128xf32>,
    return
  }
}

</mosaic_0001>

<bundles_post_ra>
// kernel: tpu_custom_call.1
= control target key start
LH: loop header
LB: loop body
LE: loop exit
PB: predicated region body
PF: predicated region fallthrough
CT: control target
= control target key end

     0   :  { %7 = vsyncpa [#allocation3], 0  ;;  %s657_s0 = inlined_call_operand.hbm [shape: f32[8,128], index: 0, kind: input, shape index: {}]   ;;  %s658_s1 = inlined_call_operand.hbm [shape: f32[392,128], index: 1, kind: input, shape index: {}]   ;;  %s659_s2 = inlined_call_operand.hbm [shape: f32[8,128], index: 2, kind: output, shape index: {}]  }
   0x1   :  { %8 = vsyncpa [#allocation6], 0 }
   0x2   :  { %9 = vsyncpa [#allocation4], 0  ;;  %s572_s9 = smov [#allocation2]   ;;  %s573_s11 = smov [#allocation5]  }
   0x3   :  { %s16_s10 = sshll.u32 %s572_s9, 4  ;;  %s25_s12 = sshll.u32 %s573_s11, 4  ;;  %s17_s10 = int_to_ptr.vmem [resolvable:$true] %s16_s10  ;;  %s26_s12 = int_to_ptr.vmem [resolvable:$true] %s25_s12 }
   0x4   :  { %s514_s13 = scalar_lea.vmem %s17_s10, 128  ;;  %p519_p1 = scmp.lt.s32.totalorder %s17_s10, %s17_s10 }
   0x5   :  { %p515_p0 = scmp.ne.s32.totalorder %s17_s10, %s514_s13  ;;  %p520_p2 = scmp.lt.s32.totalorder %s514_s13, %s514_s13 }
   0x7   :  { %p521_p3 = por %p520_p2, %p519_p1 }
   0x9   :  { %p522_p4 = pnand %p521_p3, %p515_p0 }
   0xb   :  { %525 = shalt.err (!%p522_p4)
}
   0xc   :  { %19 = dma.hbm_to_vmem [thread:$0]  %s657_s0, 128, %s17_s10, [#allocation3]  }
   0xd   :  { %s534_s16 = scalar_lea.vmem %s26_s12, 6272  ;;  %p539_p6 = scmp.lt.s32.totalorder %s26_s12, %s26_s12 }
   0xe   :  { %p535_p5 = scmp.ne.s32.totalorder %s26_s12, %s534_s16  ;;  %p540_p7 = scmp.lt.s32.totalorder %s534_s16, %s534_s16 }
  0x10   :  { %p541_p8 = por %p540_p7, %p539_p6 }
  0x12   :  { %p542_p9 = pnand %p541_p8, %p535_p5 }
  0x14   :  { %545 = shalt.err (!%p542_p9)
}
  0x15   :  { %s574_s17 = smov 128   ;;  %s575_s18 = smov 8  }
  0x16   :  { %31 = dma.hbm_to_vmem [thread:$0]  %s658_s1, 6272, %s26_s12, [#allocation6], %s574_s17, %s574_s17, %s575_s18  }
  0x17   :  { %566 = dma.done.wait [#allocation3], 128  }
  0x18   :  { %567 = vsyncadd [#allocation3], 4294967168 }
  0x19   :  { %568 = dma.done.wait [#allocation6], 6272  }
  0x1a   :  { %569 = vsyncadd [#allocation6], 4294961024  ;;  %v576_v0 = vmov 0.0   ;;  %vm577_vm0 = vmmov 0   ;;  %v54_v1 = vld [vmem:[#allocation5 + $0x78] sm:$0xff]  ;;  %v53_v2 = vld [vmem:[#allocation5 + $0x70] sm:$0xff]  ;;  %v88_v39 = vlaneseq }
  0x1b   :  { %390 = vmatprep.subr.mxu0 %v576_v0  ;;  %422 = vmatprep.mubr.msk.f32.mxu0 %vm577_vm0, %v576_v0  ;;  %v52_v3 = vld [vmem:[#allocation5 + $0x68] sm:$0xff]  ;;  %v51_v4 = vld [vmem:[#allocation5 + $0x60] sm:$0xff]  ;;  %v70_v5 = vld [vmem:[#allocation5 + $0xf8] sm:$0xff]  ;;  %s578_s0 = smov [#allocation7]  }
  0x1c   :  { %425 = vmatprep.subr.mxu1 %v576_v0  ;;  %457 = vmatprep.mubr.msk.f32.mxu1 %vm577_vm0, %v576_v0  ;;  %v50_v6 = vld [vmem:[#allocation5 + $0x58] sm:$0xff]  ;;  %v69_v7 = vld [vmem:[#allocation5 + $0xf0] sm:$0xff]  ;;  %v68_v8 = vld [vmem:[#allocation5 + $0xe8] sm:$0xff]  ;;  %v89_v40 = vshrl.u32 %v88_v39, 7  ;;  %s327_s1 = sshll.u32 %s578_s0, 4  ;;  %s328_s1 = int_to_ptr.vmem [resolvable:$true] %s327_s1 }
  0x1d   :  { %391 = vmatpush3.msra.mxu0 %v54_v1  ;;  %426 = vmatpush3.msra.mxu1 %v70_v5  ;;  %v49_v9 = vld [vmem:[#allocation5 + $0x50] sm:$0xff]  ;;  %v67_v10 = vld [vmem:[#allocation5 + $0xe0] sm:$0xff]  ;;  %v48_v11 = vld [vmem:[#allocation5 + $0x48] sm:$0xff]  ;;  %s546_s21 = scalar_lea.vmem %s328_s1, 128  ;;  %p551_p11 = scmp.lt.s32.totalorder %s328_s1, %s328_s1 }
  0x1e   :  { %392 = vmatprep.subr.mxu0 %v576_v0  ;;  %427 = vmatprep.subr.mxu1 %v576_v0  ;;  %v66_v12 = vld [vmem:[#allocation5 + $0xd8] sm:$0xff]  ;;  %v47_v13 = vld [vmem:[#allocation5 + $0x40] sm:$0xff]  ;;  %v45_v15 = vld [vmem:[#allocation5 + $0x30] sm:$0xff]  ;;  %v90_v41 = vsub.s32 0, %v89_v40  ;;  %v169_v62 = vsub.s32 1, %v89_v40  ;;  %p547_p10 = scmp.ne.s32.totalorder %s328_s1, %s546_s21  ;;  %p552_p12 = scmp.lt.s32.totalorder %s546_s21, %s546_s21 }
  0x1f   :  { %393 = vmatpush3.msra.mxu0 %v53_v2  ;;  %428 = vmatpush3.msra.mxu1 %v69_v7  ;;  %v46_v14 = vld [vmem:[#allocation5 + $0x38] sm:$0xff]  ;;  %v44_v16 = vld [vmem:[#allocation5 + $0x28] sm:$0xff]  ;;  %v43_v17 = vld [vmem:[#allocation5 + $0x20] sm:$0xff] }
  0x20   :  { %394 = vmatprep.subr.mxu0 %v576_v0  ;;  %429 = vmatprep.subr.mxu1 %v576_v0  ;;  %v42_v18 = vld [vmem:[#allocation5 + $0x18] sm:$0xff]  ;;  %v41_v19 = vld [vmem:[#allocation5 + $0x10] sm:$0xff]  ;;  %v40_v20 = vld [vmem:[#allocation5 + $0x8] sm:$0xff]  ;;  %p553_p13 = por %p552_p12, %p551_p11 }
  0x21   :  { %395 = vmatpush3.msra.mxu0 %v52_v3  ;;  %430 = vmatpush3.msra.mxu1 %v68_v8  ;;  %v39_v21 = vld [vmem:[#allocation5] sm:$0xff]  ;;  %v38_v22 = vld [vmem:[#allocation2] sm:$0xff]  ;;  %v65_v23 = vld [vmem:[#allocation5 + $0xd0] sm:$0xff]  ;;  %v248_v8 = vsub.s32 2, %v89_v40 }
  0x22   :  { %396 = vmatprep.subr.mxu0 %v576_v0  ;;  %431 = vmatprep.subr.mxu1 %v576_v0  ;;  %v64_v24 = vld [vmem:[#allocation5 + $0xc8] sm:$0xff]  ;;  %v63_v25 = vld [vmem:[#allocation5 + $0xc0] sm:$0xff]  ;;  %v62_v26 = vld [vmem:[#allocation5 + $0xb8] sm:$0xff]  ;;  %p554_p0 = pnand %p553_p13, %p547_p10 }
  0x23   :  { %397 = vmatpush3.msra.mxu0 %v51_v4  ;;  %432 = vmatpush3.msra.mxu1 %v67_v10  ;;  %v61_v27 = vld [vmem:[#allocation5 + $0xb0] sm:$0xff]  ;;  %v60_v28 = vld [vmem:[#allocation5 + $0xa8] sm:$0xff]  ;;  %v59_v29 = vld [vmem:[#allocation5 + $0xa0] sm:$0xff] }
  0x24   :  { %398 = vmatprep.subr.mxu0 %v576_v0  ;;  %433 = vmatprep.subr.mxu1 %v576_v0  ;;  %v58_v30 = vld [vmem:[#allocation5 + $0x98] sm:$0xff]  ;;  %v57_v31 = vld [vmem:[#allocation5 + $0x90] sm:$0xff]  ;;  %v56_v32 = vld [vmem:[#allocation5 + $0x88] sm:$0xff] }
  0x25   :  { %399 = vmatpush3.msra.mxu0 %v50_v6  ;;  %434 = vmatpush3.msra.mxu1 %v66_v12  ;;  %v55_v33 = vld [vmem:[#allocation5 + $0x80] sm:$0xff]  ;;  %v86_v34 = vld [vmem:[#allocation5 + $0x178] sm:$0xff]  ;;  %v85_v35 = vld [vmem:[#allocation5 + $0x170] sm:$0xff] }
  0x26   :  { %400 = vmatprep.subr.mxu0 %v576_v0  ;;  %435 = vmatprep.subr.mxu1 %v576_v0  ;;  %v84_v36 = vld [vmem:[#allocation5 + $0x168] sm:$0xff]  ;;  %v83_v37 = vld [vmem:[#allocation5 + $0x160] sm:$0xff]  ;;  %v82_v38 = vld [vmem:[#allocation5 + $0x158] sm:$0xff] }
  0x27   :  { %401 = vmatpush3.msra.mxu0 %v49_v9  ;;  %436 = vmatpush3.msra.mxu1 %v65_v23  ;;  %v87_v42 = vld [vmem:[#allocation5 + $0x180] sm:$0xff]  ;;  %v81_v51 = vld [vmem:[#allocation5 + $0x150] sm:$0xff]  ;;  %v80_v52 = vld [vmem:[#allocation5 + $0x148] sm:$0xff] }
  0x28   :  { %402 = vmatprep.subr.mxu0 %v576_v0  ;;  %437 = vmatprep.subr.mxu1 %v576_v0  ;;  %v91_v43 = vrot.slane %v87_v42, %v90_v41  ;;  %v79_v53 = vld [vmem:[#allocation5 + $0x140] sm:$0xff]  ;;  %v78_v54 = vld [vmem:[#allocation5 + $0x138] sm:$0xff]  ;;  %v77_v55 = vld [vmem:[#allocation5 + $0x130] sm:$0xff]  ;;  %v170_v63 = vrot.slane %v87_v42, %v169_v62  ;;  %v249_v9 = vrot.slane %v87_v42, %v248_v8 }
  0x29   :  { %403 = vmatpush3.msra.mxu0 %v48_v11  ;;  %438 = vmatpush3.msra.mxu1 %v64_v24  ;;  %v76_v56 = vld [vmem:[#allocation5 + $0x128] sm:$0xff]  ;;  %v75_v57 = vld [vmem:[#allocation5 + $0x120] sm:$0xff]  ;;  %v74_v58 = vld [vmem:[#allocation5 + $0x118] sm:$0xff] }
  0x2a   :  { %404 = vmatprep.subr.mxu0 %v576_v0  ;;  %439 = vmatprep.subr.mxu1 %v576_v0  ;;  %v73_v59 = vld [vmem:[#allocation5 + $0x110] sm:$0xff]  ;;  %v72_v60 = vld [vmem:[#allocation5 + $0x108] sm:$0xff]  ;;  %v71_v61 = vld [vmem:[#allocation5 + $0x100] sm:$0xff] }
  0x2b   :  { %405 = vmatpush3.msra.mxu0 %v47_v13  ;;  %440 = vmatpush3.msra.mxu1 %v63_v25 }
  0x2c   :  { %406 = vmatprep.subr.mxu0 %v576_v0  ;;  %441 = vmatprep.subr.mxu1 %v576_v0 }
  0x2d   :  { %407 = vmatpush3.msra.mxu0 %v46_v14  ;;  %442 = vmatpush3.msra.mxu1 %v62_v26 }
  0x2e   :  { %408 = vmatprep.subr.mxu0 %v576_v0  ;;  %443 = vmatprep.subr.mxu1 %v576_v0 }
  0x2f   :  { %409 = vmatpush3.msra.mxu0 %v45_v15  ;;  %444 = vmatpush3.msra.mxu1 %v61_v27 }
  0x30   :  { %410 = vmatprep.subr.mxu0 %v576_v0  ;;  %445 = vmatprep.subr.mxu1 %v576_v0 }
  0x31   :  { %411 = vmatpush3.msra.mxu0 %v44_v16  ;;  %446 = vmatpush3.msra.mxu1 %v60_v28 }
  0x32   :  { %412 = vmatprep.subr.mxu0 %v576_v0  ;;  %447 = vmatprep.subr.mxu1 %v576_v0 }
  0x33   :  { %413 = vmatpush3.msra.mxu0 %v43_v17  ;;  %448 = vmatpush3.msra.mxu1 %v59_v29 }
  0x34   :  { %414 = vmatprep.subr.mxu0 %v576_v0  ;;  %449 = vmatprep.subr.mxu1 %v576_v0 }
  0x35   :  { %415 = vmatpush3.msra.mxu0 %v42_v18  ;;  %450 = vmatpush3.msra.mxu1 %v58_v30 }
  0x36   :  { %416 = vmatprep.subr.mxu0 %v576_v0  ;;  %451 = vmatprep.subr.mxu1 %v576_v0 }
  0x37   :  { %417 = vmatpush3.msra.mxu0 %v41_v19  ;;  %452 = vmatpush3.msra.mxu1 %v57_v31 }
  0x38   :  { %418 = vmatprep.subr.mxu0 %v576_v0  ;;  %453 = vmatprep.subr.mxu1 %v576_v0 }
  0x39   :  { %419 = vmatpush3.msra.mxu0 %v40_v20  ;;  %454 = vmatpush3.msra.mxu1 %v56_v32 }
  0x3a   :  { %420 = vmatprep.subr.mxu0 %v576_v0  ;;  %455 = vmatprep.subr.mxu1 %v576_v0 }
  0x3b   :  { %421 = vmatpush3.msra.mxu0 %v39_v21  ;;  %456 = vmatpush3.msra.mxu1 %v55_v33 }
  0x3c   :  { %423 = vmatmul.mubr.f32.vlgmr.msra.gmra.mxu0 %v38_v22  ;;  %460 = vmatprep.subr.mxu0 %v576_v0 }
  0x3d   :  { %492 = vmatprep.mubr.msk.f32.mxu0 %vm577_vm0, %v576_v0  ;;  %461 = vmatpush3.msra.mxu0 %v86_v34 }
  0x3e   :  { %462 = vmatprep.subr.mxu0 %v576_v0 }
  0x3f   :  { %463 = vmatpush3.msra.mxu0 %v85_v35 }
  0x40   :  { %464 = vmatprep.subr.mxu0 %v576_v0 }
  0x41   :  { %465 = vmatpush3.msra.mxu0 %v84_v36 }
  0x42   :  { %466 = vmatprep.subr.mxu0 %v576_v0 }
  0x43   :  { %467 = vmatpush3.msra.mxu0 %v83_v37 }
  0x44   :  { %468 = vmatprep.subr.mxu0 %v576_v0 }
  0x45   :  { %469 = vmatpush3.msra.mxu0 %v82_v38 }
  0x46   :  { %470 = vmatprep.subr.mxu0 %v576_v0 }
  0x47   :  { %471 = vmatpush3.msra.mxu0 %v81_v51 }
  0x48   :  { %472 = vmatprep.subr.mxu0 %v576_v0 }
  0x49   :  { %473 = vmatpush3.msra.mxu0 %v80_v52 }
  0x4a   :  { %474 = vmatprep.subr.mxu0 %v576_v0 }
  0x4b   :  { %475 = vmatpush3.msra.mxu0 %v79_v53 }
  0x4c   :  { %476 = vmatprep.subr.mxu0 %v576_v0 }
  0x4d   :  { %477 = vmatpush3.msra.mxu0 %v78_v54 }
  0x4e   :  { %478 = vmatprep.subr.mxu0 %v576_v0 }
  0x4f   :  { %479 = vmatpush3.msra.mxu0 %v77_v55 }
  0x50   :  { %480 = vmatprep.subr.mxu0 %v576_v0 }
  0x51   :  { %481 = vmatpush3.msra.mxu0 %v76_v56 }
  0x52   :  { %482 = vmatprep.subr.mxu0 %v576_v0 }
  0x53   :  { %483 = vmatpush3.msra.mxu0 %v75_v57 }
  0x54   :  { %484 = vmatprep.subr.mxu0 %v576_v0 }
  0x55   :  { %485 = vmatpush3.msra.mxu0 %v74_v58 }
  0x56   :  { %486 = vmatprep.subr.mxu0 %v576_v0 }
  0x57   :  { %487 = vmatpush3.msra.mxu0 %v73_v59 }
  0x58   :  { %488 = vmatprep.subr.mxu0 %v576_v0 }
  0x59   :  { %489 = vmatpush3.msra.mxu0 %v72_v60 }
  0x5a   :  { %490 = vmatprep.subr.mxu0 %v576_v0 }
  0x5b   :  { %491 = vmatpush3.msra.mxu0 %v71_v61 }
  0xfc   :  { %v158_v44 = vpop.f32.mrf.mxu0 }
  0xfd   :  { %v159_v45 = vadd.f32 %v158_v44, %v91_v43 }
  0xfe   :  { %v424_v46 = vpop.f32.mrf.mxu0 }
  0xff   :  { %v163_v47 = vmul.f32 1.442695, %v159_v45  ;;  %vm162_vm1 = vcmp.gt.f32.partialorder %v159_v45, 0.0 }
 0x101   :  { %502 = vpow2.f32 %v163_v47 }
 0x10e   :  { %v503_v48 = vpop.eup %502 }
 0x10f   :  { %v337_v49 = vadd.f32 -1.0, %v503_v48 }
 0x111   :  { %v166_v50 = vsel %vm162_vm1, %v159_v45, %v337_v49 }
 0x112   :  { %458 = vmatmul.mubr.f32.vlgmr.msra.gmra.mxu1 %v166_v50 }
 0x1d2   :  { %v237_v1 = vpop.f32.mrf.mxu1 }
 0x1d3   :  { %v238_v2 = vadd.f32 %v237_v1, %v170_v63 }
 0x1d4   :  { %v459_v3 = vpop.f32.mrf.mxu1 }
 0x1d5   :  { %v242_v4 = vmul.f32 1.442695, %v238_v2  ;;  %vm241_vm2 = vcmp.gt.f32.partialorder %v238_v2, 0.0 }
 0x1d7   :  { %504 = vpow2.f32 %v242_v4 }
 0x1e4   :  { %v505_v5 = vpop.eup %504 }
 0x1e5   :  { %v338_v6 = vadd.f32 -1.0, %v505_v5 }
 0x1e7   :  { %v245_v7 = vsel %vm241_vm2, %v238_v2, %v338_v6 }
 0x1e8   :  { %493 = vmatmul.mubr.f32.vlgmr.msra.gmra.mxu0 %v245_v7 }
 0x2a8   :  { %v316_v10 = vpop.f32.mrf.mxu0 }
 0x2a9   :  { %v317_v11 = vadd.f32 %v316_v10, %v249_v9 }
 0x2aa   :  { %v494_v0 = vpop.f32.mrf.mxu0 }
 0x2ab   :  { %320 = vst [vmem:[#allocation7] sm:$0xff] %v317_v11 }
 0x2ac   :  { %557 = shalt.err (!%p554_p0)
}
 0x2ad   :  { %330 = dma.vmem_to_hbm [thread:$0]  %s328_s1, 128, %s659_s2, [#allocation4]  }
 0x2ae   :  { %570 = dma.done.wait [#allocation4], 128  }
 0x2af   :  { %571 = vsyncadd [#allocation4], 4294967168 }
 0x2b0   :  { %334 = vsyncpa [#allocation3], 1 }
 0x2b1   :  { %335 = vsyncpa [#allocation6], 1 }
 0x2b2   :  { %336 = vsyncpa [#allocation4], 1 }

</bundles_post_ra>
